<compile_context>
chip_gen: v7x
topology: tpu7x:2x2x1
jax: 0.10.0
libtpu: 0.0.40
codegen_flags: <defaults>
</compile_context>

<pallas_src>
import functools

import jax
import jax.numpy as jnp
from jax.experimental import pallas as pl
from jax.experimental.pallas import tpu as pltpu

INPUT_DIM = 4     # CartPole-v1 observation_space.shape[0]
OUTPUT_DIM = 2    # CartPole-v1 action_space.n
HIDDEN_DIM = 64
FC3_PAD = 8       # fc3 out-dim padded to one full sublane group


def _round_up(x, m):
    return ((x + m - 1) // m) * m


def _pick_batch_tile(b_pad, batch_tile):
    """Largest multiple of 128 that (a) divides b_pad, (b) is <= the clamped
    requested tile, and (c) leaves >= 2 grid steps when b_pad allows it (so the
    'parallel' grid axis can shard across v7x's two TensorCores)."""
    n = b_pad // 128
    # Clamp the user-supplied tile to a 128-multiple (the (8,128) lane rule).
    cap = max(128, (min(batch_tile, b_pad) // 128) * 128)
    if b_pad >= 256:
        cap = min(cap, _round_up(pl.cdiv(b_pad, 2), 128))
    c_cap = max(1, cap // 128)
    best = 1
    for c in range(1, n + 1):
        if n % c == 0 and c <= c_cap:
            best = c
    return 128 * best


def _fc1_on_mxu_default():
    """v6e/v7x: fc1 on the MXU (VALU is the binding slot; MXU has slack beyond the
    64x64 fc2). v5e: keep fc1 on the VPU (its MXU is ~4.6x slower and f32 needs
    extra passes, so moving fc1 there can flip the binding unit)."""
    try:
        kind = jax.devices()[0].device_kind.lower()
    except Exception:
        return True
    return not ("v5 lite" in kind or "v5e" in kind or "v5litepod" in kind)


def actor_kernel(x_ref, w1_ref, b1_ref, w2_ref, b2_ref, w3_ref, b3_ref, out_ref,
                 *, fc1_on_mxu):
    # x_ref: (INPUT_DIM, TB) -- feature-major, batch on the lane axis.
    x = x_ref[...]

    if fc1_on_mxu:
        # fc1 on the MXU: (64, 4) @ (4, TB); frees the VALU slot on v6e/v7x.
        h1 = jnp.dot(w1_ref[...], x, preferred_element_type=jnp.float32) + b1_ref[...]
    else:
        # v5e path: 4 unrolled VPU broadcast FMAs.
        h1 = b1_ref[...] + w1_ref[:, 0:1] * x[0:1, :]
        for k in range(1, INPUT_DIM):
            h1 = h1 + w1_ref[:, k:k + 1] * x[k:k + 1, :]
    h1 = jnp.maximum(h1, 0.0)

    # fc2 + relu: (64, 64) @ (64, TB) on the MXU, N = TB lane-dense.
    h2 = jnp.dot(w2_ref[...], h1, preferred_element_type=jnp.float32) + b2_ref[...]
    h2 = jnp.maximum(h2, 0.0)

    # fc3: out-dim padded to 8 rows (rows 2..7 are zeros; never read below).
    logits = jnp.dot(w3_ref[...], h2, preferred_element_type=jnp.float32) + b3_ref[...]

    # 2-class softmax via row slices: pure VPU/EUP work, no cross-lane reductions.
    l0 = logits[0:1, :]
    l1 = logits[1:2, :]
    m = jnp.maximum(l0, l1)
    e0 = jnp.exp(l0 - m)
    e1 = jnp.exp(l1 - m)
    d = e0 + e1
    # EUP approximate reciprocal (free slot) + one Newton-Raphson refinement step:
    # relative error ~2e-8, well inside the 1e-5 tolerance, no exact divide on VALU.
    inv = pl.reciprocal(d, approx=True)
    inv = inv * (2.0 - d * inv)
    # Store rows directly (no concat temp / extra VMEM copy).
    out_ref[0:1, :] = (e0 * inv).astype(out_ref.dtype)
    out_ref[1:2, :] = (e1 * inv).astype(out_ref.dtype)


def actor_forward(x, params, *, batch_tile=4096, fc1_on_mxu=None):
    """x: (B, INPUT_DIM) f32. params in PyTorch Linear layout (W: (out, in), b: (out,)).
    Returns (B, OUTPUT_DIM) action probabilities."""
    w1, b1, w2, b2, w3, b3 = params
    B = x.shape[0]
    if fc1_on_mxu is None:
        fc1_on_mxu = _fc1_on_mxu_default()

    # Pad the batch to a multiple of 128 lanes only (NOT to a full tile), then pick
    # a tile that divides the padded batch -> no wasted grid steps.
    b_pad = _round_up(B, 128)
    if b_pad != B:
        x = jnp.pad(x, ((0, b_pad - B), (0, 0)))
    tb = _pick_batch_tile(b_pad, batch_tile)

    # Layout plumbing (outside the kernel): batch onto the fast (lane) axis,
    # biases as columns, fc3 padded to 8 output rows.
    x_t = x.T                                                     # (4, b_pad)
    b1c = b1.reshape(HIDDEN_DIM, 1)
    b2c = b2.reshape(HIDDEN_DIM, 1)
    w3p = jnp.pad(w3, ((0, FC3_PAD - OUTPUT_DIM), (0, 0)))        # (8, 64)
    b3p = jnp.pad(b3, (0, FC3_PAD - OUTPUT_DIM)).reshape(FC3_PAD, 1)

    grid = (b_pad // tb,)
    const = lambda i: (0, 0)   # weights/biases: same block every step (VMEM-resident)

    out_t = pl.pallas_call(
        functools.partial(actor_kernel, fc1_on_mxu=fc1_on_mxu),
        out_shape=jax.ShapeDtypeStruct((OUTPUT_DIM, b_pad), jnp.float32),
        grid=grid,
        in_specs=[
            pl.BlockSpec((INPUT_DIM, tb), lambda i: (0, i)),
            pl.BlockSpec((HIDDEN_DIM, INPUT_DIM), const),
            pl.BlockSpec((HIDDEN_DIM, 1), const),
            pl.BlockSpec((HIDDEN_DIM, HIDDEN_DIM), const),
            pl.BlockSpec((HIDDEN_DIM, 1), const),
            pl.BlockSpec((FC3_PAD, HIDDEN_DIM), const),
            pl.BlockSpec((FC3_PAD, 1), const),
        ],
        out_specs=pl.BlockSpec((OUTPUT_DIM, tb), lambda i: (0, i)),
        compiler_params=pltpu.CompilerParams(
            dimension_semantics=("parallel",),   # megacore-shardable batch axis
        ),
    )(x_t, w1, b1c, w2, b2c, w3p, b3p)

    # Back to the PyTorch-facing (B, 2) layout; drop batch padding.
    return out_t.T[:B]


def init_params(key):
    """PyTorch nn.Linear default init (uniform +-1/sqrt(fan_in)), PyTorch layout:
    W: (out_features, in_features), b: (out_features,)."""
    def linear(key, fan_in, fan_out):
        kw, kb = jax.random.split(key)
        bound = 1.0 / jnp.sqrt(fan_in)
        w = jax.random.uniform(kw, (fan_out, fan_in), jnp.float32, -bound, bound)
        b = jax.random.uniform(kb, (fan_out,), jnp.float32, -bound, bound)
        return w, b

    k1, k2, k3 = jax.random.split(key, 3)
    w1, b1 = linear(k1, INPUT_DIM, HIDDEN_DIM)
    w2, b2 = linear(k2, HIDDEN_DIM, HIDDEN_DIM)
    w3, b3 = linear(k3, HIDDEN_DIM, OUTPUT_DIM)
    return (w1, b1, w2, b2, w3, b3)


def reference_forward(x, params):
    w1, b1, w2, b2, w3, b3 = params
    h1 = jnp.maximum(x @ w1.T + b1, 0.0)
    h2 = jnp.maximum(h1 @ w2.T + b2, 0.0)
    logits = h2 @ w3.T + b3
    return jax.nn.softmax(logits, axis=-1)


if __name__ == "__main__":
    key = jax.random.PRNGKey(0)
    kx, kp = jax.random.split(key)

    params = init_params(kp)

    # Small batch of CartPole observations (single-tile path).
    B = 8
    x = jax.random.normal(kx, (B, INPUT_DIM), dtype=jnp.float32)
    probs = actor_forward(x, params)
    jax.block_until_ready(probs)

    ref = reference_forward(x, params)
    assert probs.shape == (B, OUTPUT_DIM)
    assert jnp.allclose(jnp.sum(probs, axis=-1), 1.0, atol=1e-5)
    assert jnp.allclose(probs, ref, atol=1e-5, rtol=1e-5)

    # Multi-tile grid + 128-only batch padding path (non-aligned batch, tile divides
    # the padded batch: B=300 -> b_pad=384, tb=128, grid=(3,)).
    B2 = 300
    x2 = jax.random.normal(kx, (B2, INPUT_DIM), dtype=jnp.float32)
    probs2 = actor_forward(x2, params, batch_tile=128)
    jax.block_until_ready(probs2)
    ref2 = reference_forward(x2, params)
    assert probs2.shape == (B2, OUTPUT_DIM)
    assert jnp.allclose(jnp.sum(probs2, axis=-1), 1.0, atol=1e-5)
    assert jnp.allclose(probs2, ref2, atol=1e-5, rtol=1e-5)

    # VPU fc1 path (v5e fallback) stays correct regardless of the detected chip.
    probs3 = actor_forward(x2, params, batch_tile=256, fc1_on_mxu=False)
    jax.block_until_ready(probs3)
    assert jnp.allclose(probs3, ref2, atol=1e-5, rtol=1e-5)

    print("KERNEL_OK")
</pallas_src>

<mosaic_0001>
module attributes {stable_mosaic.version = 11 : i64} {
  func.func @actor_kernel(%arg0: i32, %arg1: memref<4x128xf32, #tpu.memory_space<vmem>>, %arg2: memref<64x4xf32, #tpu.memory_space<vmem>>, %arg3: memref<64x1xf32, #tpu.memory_space<vmem>>, %arg4: memref<64x64xf32, #tpu.memory_space<vmem>>, %arg5: memref<64x1xf32, #tpu.memory_space<vmem>>, %arg6: memref<8x64xf32, #tpu.memory_space<vmem>>, %arg7: memref<8x1xf32, #tpu.memory_space<vmem>>, %arg8: memref<2x128xf32, #tpu.memory_space<vmem>>) attributes {dimension_semantics = [#tpu.dimension_semantics<parallel>], iteration_bounds = array<i64: 1>, scalar_prefetch = 0 : i64, scratch_operands = 0 : i64, tpu.core_type = #tpu.core_type<tc>, window_params = [{transform_indices = @transform_0, window_bounds = array<i64: 4, 128>}, {pipeline_mode = #tpu.pipeline_mode<synchronous>, transform_indices = @transform_1, window_bounds = array<i64: 64, 4>}, {pipeline_mode = #tpu.pipeline_mode<synchronous>, transform_indices = @transform_2, window_bounds = array<i64: 64, 1>}, {pipeline_mode = #tpu.pipeline_mode<synchronous>, transform_indices = @transform_3, window_bounds = array<i64: 64, 64>}, {pipeline_mode = #tpu.pipeline_mode<synchronous>, transform_indices = @transform_4, window_bounds = array<i64: 64, 1>}, {pipeline_mode = #tpu.pipeline_mode<synchronous>, transform_indices = @transform_5, window_bounds = array<i64: 8, 64>}, {pipeline_mode = #tpu.pipeline_mode<synchronous>, transform_indices = @transform_6, window_bounds = array<i64: 8, 1>}, {transform_indices = @transform_7, window_bounds = array<i64: 2, 128>}]} {
    %c0 = arith.constant 0 : index
    %c0_0 = arith.constant 0 : index
    %0 = vector.load %arg1[%c0, %c0_0] : memref<4x128xf32, #tpu.memory_space<vmem>>, vector<4x128xf32>
    %c0_1 = arith.constant 0 : index
    %c0_2 = arith.constant 0 : index
    %1 = vector.load %arg2[%c0_1, %c0_2] : memref<64x4xf32, #tpu.memory_space<vmem>>, vector<64x4xf32>
    %cst = arith.constant dense<0.000000e+00> : vector<64x128xf32>
    %2 = tpu.matmul %1, %0, %cst {dimension_numbers = #tpu.dot_dimension_numbers<[1], [0], [0], [1], [0, 0, 1, 1], [], []>} : vector<64x4xf32>, vector<4x128xf32>, vector<64x128xf32> -> vector<64x128xf32>
    %c0_3 = arith.constant 0 : index
    %c0_4 = arith.constant 0 : index
    %3 = vector.load %arg3[%c0_3, %c0_4] : memref<64x1xf32, #tpu.memory_space<vmem>>, vector<64x1xf32>
    %4 = vector.broadcast %3 : vector<64x1xf32> to vector<64x128xf32>
    %5 = arith.addf %2, %4 : vector<64x128xf32>
    %cst_5 = arith.constant 0.000000e+00 : f32
    %6 = vector.broadcast %cst_5 : f32 to vector<64x128xf32>
    %7 = arith.maximumf %5, %6 : vector<64x128xf32>
    %c0_6 = arith.constant 0 : index
    %c0_7 = arith.constant 0 : index
    %8 = vector.load %arg4[%c0_6, %c0_7] : memref<64x64xf32, #tpu.memory_space<vmem>>, vector<64x64xf32>
    %cst_8 = arith.constant dense<0.000000e+00> : vector<64x128xf32>
    %9 = tpu.matmul %8, %7, %cst_8 {dimension_numbers = #tpu.dot_dimension_numbers<[1], [0], [0], [1], [0, 0, 1, 1], [], []>} : vector<64x64xf32>, vector<64x128xf32>, vector<64x128xf32> -> vector<64x128xf32>
    %c0_9 = arith.constant 0 : index
    %c0_10 = arith.constant 0 : index
    %10 = vector.load %arg5[%c0_9, %c0_10] : memref<64x1xf32, #tpu.memory_space<vmem>>, vector<64x1xf32>
    %11 = vector.broadcast %10 : vector<64x1xf32> to vector<64x128xf32>
    %12 = arith.addf %9, %11 : vector<64x128xf32>
    %cst_11 = arith.constant 0.000000e+00 : f32
    %13 = vector.broadcast %cst_11 : f32 to vector<64x128xf32>
    %14 = arith.maximumf %12, %13 : vector<64x128xf32>
    %c0_12 = arith.constant 0 : index
    %c0_13 = arith.constant 0 : index
    %15 = vector.load %arg6[%c0_12, %c0_13] : memref<8x64xf32, #tpu.memory_space<vmem>>, vector<8x64xf32>
    %cst_14 = arith.constant dense<0.000000e+00> : vector<8x128xf32>
    %16 = tpu.matmul %15, %14, %cst_14 {dimension_numbers = #tpu.dot_dimension_numbers<[1], [0], [0], [1], [0, 0, 1, 1], [], []>} : vector<8x64xf32>, vector<64x128xf32>, vector<8x128xf32> -> vector<8x128xf32>
    %c0_15 = arith.constant 0 : index
    %c0_16 = arith.constant 0 : index
    %17 = vector.load %arg7[%c0_15, %c0_16] : memref<8x1xf32, #tpu.memory_space<vmem>>, vector<8x1xf32>
    %18 = vector.broadcast %17 : vector<8x1xf32> to vector<8x128xf32>
    %19 = arith.addf %16, %18 : vector<8x128xf32>
    %20 = vector.extract_strided_slice %19 {offsets = [0, 0], sizes = [1, 128], strides = [1, 1]} : vector<8x128xf32> to vector<1x128xf32>
    %21 = vector.extract_strided_slice %19 {offsets = [1, 0], sizes = [1, 128], strides = [1, 1]} : vector<8x128xf32> to vector<1x128xf32>
    %22 = arith.maximumf %20, %21 : vector<1x128xf32>
    %23 = arith.subf %20, %22 : vector<1x128xf32>
    %24 = math.exp %23 : vector<1x128xf32>
    %25 = arith.subf %21, %22 : vector<1x128xf32>
    %26 = math.exp %25 : vector<1x128xf32>
    %27 = arith.addf %24, %26 : vector<1x128xf32>
    %28 = tpu.reciprocal %27 {approx = true} : vector<1x128xf32> -> vector<1x128xf32>
    %29 = arith.mulf %27, %28 : vector<1x128xf32>
    %cst_17 = arith.constant 2.000000e+00 : f32
    %30 = vector.broadcast %cst_17 : f32 to vector<1x128xf32>
    %31 = arith.subf %30, %29 : vector<1x128xf32>
    %32 = arith.mulf %28, %31 : vector<1x128xf32>
    %33 = arith.mulf %24, %32 : vector<1x128xf32>
    %c0_18 = arith.constant 0 : index
    %c0_19 = arith.constant 0 : index
    %34 = vector.load %arg8[%c0_18, %c0_19] : memref<2x128xf32, #tpu.memory_space<vmem>>, vector<1x128xf32>
    tpu.vector_store %arg8[%c0_18, %c0_19], %33 {strides = array<i32>} : memref<2x128xf32, #tpu.memory_space<vmem>>, vector<1x128xf32>,
    %35 = arith.mulf %26, %32 : vector<1x128xf32>
    %c1 = arith.constant 1 : index
    %c0_20 = arith.constant 0 : index
    %36 = vector.load %arg8[%c1, %c0_20] : memref<2x128xf32, #tpu.memory_space<vmem>>, vector<1x128xf32>
    tpu.vector_store %arg8[%c1, %c0_20], %35 {strides = array<i32>} : memref<2x128xf32, #tpu.memory_space<vmem>>, vector<1x128xf32>,
    return
  }
  func.func @transform_0(%arg0: i32) -> (i32, i32) {
    %c0_i32 = arith.constant 0 : i32
    %c0_i32_0 = arith.constant 0 : i32
    return %c0_i32, %arg0 : i32, i32
  }
  func.func @transform_1(%arg0: i32) -> (i32, i32) {
    %c0_i32 = arith.constant 0 : i32
    %c0_i32_0 = arith.constant 0 : i32
    %c0_i32_1 = arith.constant 0 : i32
    return %c0_i32, %c0_i32_0 : i32, i32
  }
  func.func @transform_2(%arg0: i32) -> (i32, i32) {
    %c0_i32 = arith.constant 0 : i32
    %c0_i32_0 = arith.constant 0 : i32
    %c0_i32_1 = arith.constant 0 : i32
    return %c0_i32, %c0_i32_0 : i32, i32
  }
  func.func @transform_3(%arg0: i32) -> (i32, i32) {
    %c0_i32 = arith.constant 0 : i32
    %c0_i32_0 = arith.constant 0 : i32
    %c0_i32_1 = arith.constant 0 : i32
    return %c0_i32, %c0_i32_0 : i32, i32
  }
  func.func @transform_4(%arg0: i32) -> (i32, i32) {
    %c0_i32 = arith.constant 0 : i32
    %c0_i32_0 = arith.constant 0 : i32
    %c0_i32_1 = arith.constant 0 : i32
    return %c0_i32, %c0_i32_0 : i32, i32
  }
  func.func @transform_5(%arg0: i32) -> (i32, i32) {
    %c0_i32 = arith.constant 0 : i32
    %c0_i32_0 = arith.constant 0 : i32
    %c0_i32_1 = arith.constant 0 : i32
    return %c0_i32, %c0_i32_0 : i32, i32
  }
  func.func @transform_6(%arg0: i32) -> (i32, i32) {
    %c0_i32 = arith.constant 0 : i32
    %c0_i32_0 = arith.constant 0 : i32
    %c0_i32_1 = arith.constant 0 : i32
    return %c0_i32, %c0_i32_0 : i32, i32
  }
  func.func @transform_7(%arg0: i32) -> (i32, i32) {
    %c0_i32 = arith.constant 0 : i32
    %c0_i32_0 = arith.constant 0 : i32
    return %c0_i32, %arg0 : i32, i32
  }
}

</mosaic_0001>

<bundles_post_ra>
// kernel: tpu_custom_call.1
= control target key start
LH: loop header
LB: loop body
LE: loop exit
PB: predicated region body
PF: predicated region fallthrough
CT: control target
= control target key end

     0   :  { %vm109_vm0 = vcmask 1043456   ;;  %vm84_vm1 = vcmask 31744   ;;  %v720_v4 = vmov 0   ;;  %s899_s0 = inlined_call_operand.vmem [shape: f32[4,128], index: 0, kind: input, shape index: {}]   ;;  %s900_s1 = inlined_call_operand.vmem [shape: f32[64,4], index: 1, kind: input, shape index: {}]   ;;  %s901_s2 = inlined_call_operand.vmem [shape: f32[64,1], index: 2, kind: input, shape index: {}]   ;;  %s902_s3 = inlined_call_operand.vmem [shape: f32[64,64], index: 3, kind: input, shape index: {}]   ;;  %s903_s4 = inlined_call_operand.vmem [shape: f32[64,1], index: 4, kind: input, shape index: {}]   ;;  %s904_s5 = inlined_call_operand.vmem [shape: f32[8,64], index: 5, kind: input, shape index: {}]   ;;  %s905_s6 = inlined_call_operand.vmem [shape: f32[8,1], index: 6, kind: input, shape index: {}]   ;;  %s906_s7 = inlined_call_operand.hbm [shape: f32[2,128], index: 7, kind: output, shape index: {}]  }
   0x1   :  { %v27_v0 = vld [vmem:[%s899_s0] sm:$0xf]  ;;  %v29_v2 = vld [vmem:[%s900_s1 + $0x8] sm:$0xff]  ;;  %v30_v3 = vld [vmem:[%s900_s1 + $0x10] sm:$0xff]  ;;  %688 = vset.pattern.permute.xlu0 %v720_v4  ;;  %689 = vset.pattern.permute.xlu1 %v720_v4 }
   0x2   :  { %v28_v1 = vld [vmem:[%s900_s1] sm:$0xff]  ;;  %594 = vmatprep.subr.msk.mxu0 %vm109_vm0, %v27_v0  ;;  %v38_v6 = vld [vmem:[%s901_s2 + $0x10] sm:$0xff]  ;;  %v31_v7 = vld [vmem:[%s900_s1 + $0x18] sm:$0xff] }
   0x3   :  { %596 = vmatprep.mubr.msk.f32.mxu0 %vm84_vm1, %v28_v1  ;;  %595 = vmatpush3.msk.msra.mxu0 %vm109_vm0, %v27_v0  ;;  %v36_v5 = vld [vmem:[%s901_s2] sm:$0xff]  ;;  %v37_v9 = vld [vmem:[%s901_s2 + $0x8] sm:$0xff]  ;;  %v39_v10 = vld [vmem:[%s901_s2 + $0x18] sm:$0xff] }
   0x4   :  { %597 = vmatmul.mubr.msk.f32.vlgmr.msra.gmra.mrb[0].mxu0 %vm84_vm1, %v29_v2  ;;  %46 = vperm.xlu0 %688, %v36_v5   ;;  %v32_v8 = vld [vmem:[%s900_s1 + $0x20] sm:$0xff]  ;;  %v33_v11 = vld [vmem:[%s900_s1 + $0x28] sm:$0xff] }
   0x5   :  { %599 = vmatprep.mubr.msk.f32.mxu0 %vm84_vm1, %v30_v3  ;;  %56 = vperm.xlu1 %689, %v38_v6  }
   0x8   :  { %600 = vmatmul.mubr.msk.f32.gmra.mrb[2].mxu0 %vm84_vm1, %v31_v7  ;;  %51 = vperm.xlu0 %688, %v37_v9  }
   0x9   :  { %602 = vmatprep.mubr.msk.f32.mxu0 %vm84_vm1, %v32_v8 }
   0xa   :  { %12 = vsyncpa [#allocation3], 0  ;;  %v34_v12 = vld [vmem:[%s900_s1 + $0x30] sm:$0xff]  ;;  %v40_v13 = vld [vmem:[%s901_s2 + $0x20] sm:$0xff]  ;;  %61 = vperm.xlu1 %689, %v39_v10   ;;  %vm282_vm2 = vcmask 523264   ;;  %v721_v7 = vmov 0.0|0.0  }
   0xb   :  { %v41_v14 = vld [vmem:[%s901_s2 + $0x28] sm:$0xff]  ;;  %v35_v15 = vld [vmem:[%s900_s1 + $0x38] sm:$0xff]  ;;  %v42_v16 = vld [vmem:[%s901_s2 + $0x30] sm:$0xff]  ;;  %671 = vmatprep.subr.bf16.mxu0 %v721_v7  ;;  %vm722_vm3 = vmmov 0   ;;  %v723_v8 = vmov 0.0  }
   0xc   :  { %603 = vmatmul.mubr.msk.f32.gmra.mrb[4].mxu0 %vm84_vm1, %v33_v11  ;;  %66 = vperm.xlu0 %688, %v40_v13   ;;  %v43_v17 = vld [vmem:[%s901_s2 + $0x38] sm:$0xff]  ;;  %v234_v18 = vld [vmem:[%s903_s4] sm:$0xff]  ;;  %v235_v19 = vld [vmem:[%s903_s4 + $0x8] sm:$0xff] }
   0xd   :  { %605 = vmatprep.mubr.msk.f32.mxu0 %vm84_vm1, %v34_v12  ;;  %v236_v20 = vld [vmem:[%s903_s4 + $0x10] sm:$0xff]  ;;  %v237_v21 = vld [vmem:[%s903_s4 + $0x18] sm:$0xff]  ;;  %v238_v22 = vld [vmem:[%s903_s4 + $0x20] sm:$0xff] }
   0xe   :  { %71 = vperm.xlu1 %689, %v41_v14   ;;  %v239_v23 = vld [vmem:[%s903_s4 + $0x28] sm:$0xff]  ;;  %v240_v24 = vld [vmem:[%s903_s4 + $0x30] sm:$0xff]  ;;  %v241_v25 = vld [vmem:[%s903_s4 + $0x38] sm:$0xff] }
   0xf   :  { %v421_v26 = vld [vmem:[%s905_s6] sm:$0xff]  ;;  %v227_v0 = vld [vmem:[%s902_s3 + $0x8] sm:$0xff]  ;;  %v228_v1 = vld [vmem:[%s902_s3 + $0x10] sm:$0xff] }
  0x10   :  { %606 = vmatmul.mubr.msk.f32.gmra.mrb[6].mxu0 %vm84_vm1, %v35_v15  ;;  %76 = vperm.xlu0 %688, %v42_v16   ;;  %v226_v27 = vld [vmem:[%s902_s3] sm:$0xff]  ;;  %v229_v2 = vld [vmem:[%s902_s3 + $0x18] sm:$0xff]  ;;  %v231_v4 = vld [vmem:[%s902_s3 + $0x28] sm:$0xff] }
  0x11   :  { %624 = vmatprep.mubr.msk.f32.mxu1 %vm282_vm2, %v226_v27  ;;  %v230_v3 = vld [vmem:[%s902_s3 + $0x20] sm:$0xff]  ;;  %v232_v5 = vld [vmem:[%s902_s3 + $0x30] sm:$0xff]  ;;  %v233_v6 = vld [vmem:[%s902_s3 + $0x38] sm:$0xff]  ;;  %652 = vmatprep.mubr.msk.f32.mxu0 %vm722_vm3, %v723_v8 }
  0x12   :  { %81 = vperm.xlu1 %689, %v43_v17  }
  0x14   :  { %244 = vperm.xlu0 %688, %v234_v18  }
  0x16   :  { %249 = vperm.xlu1 %689, %v235_v19  }
  0x18   :  { %254 = vperm.xlu0 %688, %v236_v20  }
  0x1a   :  { %259 = vperm.xlu1 %689, %v237_v21  }
  0x1c   :  { %264 = vperm.xlu0 %688, %v238_v22  }
  0x1e   :  { %269 = vperm.xlu1 %689, %v239_v23  }
  0x20   :  { %274 = vperm.xlu0 %688, %v240_v24  }
  0x22   :  { %279 = vperm.xlu1 %689, %v241_v25  }
  0x24   :  { %424 = vperm.xlu0 %688, %v421_v26  }
  0x83   :  { %v47_v28 = vpop.permute.xlu0 %46 }
  0x84   :  { %v57_v29 = vpop.permute.xlu1 %56 }
  0x87   :  { %v52_v30 = vpop.permute.xlu0 %51 }
  0x89   :  { %v62_v31 = vpop.permute.xlu1 %61 }
  0x8b   :  { %v67_v44 = vpop.permute.xlu0 %66 }
  0x8d   :  { %v72_v41 = vpop.permute.xlu1 %71 }
  0x8f   :  { %v77_v56 = vpop.permute.xlu0 %76 }
  0x91   :  { %v82_v53 = vpop.permute.xlu1 %81 }
  0x93   :  { %v245_v10 = vpop.permute.xlu0 %244 }
  0x95   :  { %v250_v9 = vpop.permute.xlu1 %249 }
  0x97   :  { %v255_v13 = vpop.permute.xlu0 %254 }
  0x99   :  { %v260_v11 = vpop.permute.xlu1 %259 }
  0x9b   :  { %v265_v25 = vpop.permute.xlu0 %264 }
  0x9d   :  { %v270_v22 = vpop.permute.xlu1 %269 }
  0xd7   :  { %v598_v32 = vpop.f32.mrb[0].mxu0 }
  0xd8   :  { %v185_v33 = vadd.f32 %v598_v32, %v52_v30  ;;  %v179_v34 = vpop.f32.mrb[1].mxu0 }
  0xd9   :  { %v180_v35 = vadd.f32 %v179_v34, %v47_v28  ;;  %v280_v34 = vpop.permute.xlu1 %279 }
  0xda   :  { %v219_v36 = vmax.f32 %v185_v33, 0.0 }
  0xdb   :  { %v218_v37 = vmax.f32 %v180_v35, 0.0  ;;  %v601_v38 = vpop.f32.mrb[2].mxu0 }
  0xdc   :  { %v195_v39 = vadd.f32 %v601_v38, %v62_v31  ;;  %v189_v40 = vpop.f32.mrb[3].mxu0 }
  0xdd   :  { %v190_v42 = vadd.f32 %v189_v40, %v57_v29  ;;  %v655_v43 = vpack.c.bf16 %v219_v36, %v218_v37  ;;  %v275_v37 = vpop.permute.xlu0 %274 }
  0xde   :  { %v221_v45 = vmax.f32 %v195_v39, 0.0 }
  0xdf   :  { %v220_v46 = vmax.f32 %v190_v42, 0.0  ;;  %v604_v47 = vpop.f32.mrb[4].mxu0  ;;  %656 = vmatprep.subr.bf16.mxu1 %v655_v43 }
  0xe0   :  { %v205_v48 = vadd.f32 %v604_v47, %v72_v41  ;;  %v199_v49 = vpop.f32.mrb[5].mxu0  ;;  %658 = vmatpush3.bf16.msra.mxu1 %v655_v43 }
  0xe1   :  { %v659_v50 = vpack.c.bf16 %v221_v45, %v220_v46  ;;  %v200_v51 = vadd.f32 %v199_v49, %v67_v44  ;;  %v420_v45 = vld [vmem:[%s904_s5] sm:$0xff]  ;;  %v425_v46 = vpop.permute.xlu0 %424  ;;  %s724_s5 = smov [#allocation2]  }
  0xe2   :  { %v223_v52 = vmax.f32 %v205_v48, 0.0  ;;  %s534_s2 = sshll.u32 %s724_s5, 4  ;;  %s535_s2 = int_to_ptr.vmem [resolvable:$true] %s534_s2 }
  0xe3   :  { %v222_v54 = vmax.f32 %v200_v51, 0.0  ;;  %v607_v55 = vpop.f32.mrb[6].mxu0  ;;  %660 = vmatprep.subr.bf16.mxu1 %v659_v50  ;;  %s696_s16 = scalar_lea.vmem %s535_s2, 32  ;;  %p701_p1 = scmp.lt.s32.totalorder %s535_s2, %s535_s2 }
  0xe4   :  { %v215_v57 = vadd.f32 %v607_v55, %v82_v53  ;;  %v209_v58 = vpop.f32.mrb[7].mxu0  ;;  %662 = vmatpush3.bf16.msra.mxu1 %v659_v50  ;;  %p697_p0 = scmp.ne.s32.totalorder %s535_s2, %s696_s16  ;;  %p702_p2 = scmp.lt.s32.totalorder %s696_s16, %s696_s16 }
  0xe5   :  { %v663_v59 = vpack.c.bf16 %v223_v52, %v222_v54  ;;  %v210_v60 = vadd.f32 %v209_v58, %v77_v56 }
  0xe6   :  { %v225_v61 = vmax.f32 %v215_v57, 0.0  ;;  %p703_p3 = por %p702_p2, %p701_p1 }
  0xe7   :  { %v224_v62 = vmax.f32 %v210_v60, 0.0  ;;  %664 = vmatprep.subr.bf16.mxu1 %v663_v59 }
  0xe8   :  { %666 = vmatpush3.bf16.msra.mxu1 %v663_v59  ;;  %p704_p4 = pnand %p703_p3, %p697_p0 }
  0xe9   :  { %v667_v63 = vpack.c.bf16 %v225_v61, %v224_v62 }
  0xeb   :  { %668 = vmatprep.subr.bf16.mxu1 %v667_v63 }
  0xec   :  { %670 = vmatpush3.bf16.msra.mxu1 %v667_v63 }
  0xef   :  { %625 = vmatmul.mubr.msk.f32.vlgmr.msra.gmra.mrb[0].mxu1 %vm282_vm2, %v227_v0 }
  0xf0   :  { %627 = vmatprep.mubr.msk.f32.mxu1 %vm282_vm2, %v228_v1 }
  0xf3   :  { %628 = vmatmul.mubr.msk.f32.gmra.mrb[2].mxu1 %vm282_vm2, %v229_v2 }
  0xf4   :  { %630 = vmatprep.mubr.msk.f32.mxu1 %vm282_vm2, %v230_v3 }
  0xf7   :  { %631 = vmatmul.mubr.msk.f32.gmra.mrb[4].mxu1 %vm282_vm2, %v231_v4 }
  0xf8   :  { %633 = vmatprep.mubr.msk.f32.mxu1 %vm282_vm2, %v232_v5 }
  0xfb   :  { %634 = vmatmul.mubr.msk.f32.gmra.mrb[6].mxu1 %vm282_vm2, %v233_v6 }
 0x1c2   :  { %v626_v12 = vpop.f32.mrb[0].mxu1 }
 0x1c3   :  { %v379_v14 = vadd.f32 %v626_v12, %v250_v9  ;;  %v373_v15 = vpop.f32.mrb[1].mxu1 }
 0x1c4   :  { %v374_v16 = vadd.f32 %v373_v15, %v245_v10 }
 0x1c5   :  { %v413_v17 = vmax.f32 %v379_v14, 0.0 }
 0x1c6   :  { %v412_v18 = vmax.f32 %v374_v16, 0.0  ;;  %v629_v19 = vpop.f32.mrb[2].mxu1 }
 0x1c7   :  { %v389_v20 = vadd.f32 %v629_v19, %v260_v11  ;;  %v383_v21 = vpop.f32.mrb[3].mxu1 }
 0x1c8   :  { %v672_v23 = vpack.c.bf16 %v413_v17, %v412_v18  ;;  %v384_v24 = vadd.f32 %v383_v21, %v255_v13 }
 0x1c9   :  { %v415_v26 = vmax.f32 %v389_v20, 0.0 }
 0x1ca   :  { %v414_v27 = vmax.f32 %v384_v24, 0.0  ;;  %v632_v28 = vpop.f32.mrb[4].mxu1  ;;  %673 = vmatpush3.bf16.msra.mxu0 %v672_v23 }
 0x1cb   :  { %v399_v29 = vadd.f32 %v632_v28, %v270_v22  ;;  %v393_v30 = vpop.f32.mrb[5].mxu1  ;;  %674 = vmatprep.subr.bf16.mxu0 %v721_v7 }
 0x1cc   :  { %v675_v31 = vpack.c.bf16 %v415_v26, %v414_v27  ;;  %v394_v32 = vadd.f32 %v393_v30, %v265_v25 }
 0x1cd   :  { %v417_v33 = vmax.f32 %v399_v29, 0.0 }
 0x1ce   :  { %v416_v35 = vmax.f32 %v394_v32, 0.0  ;;  %v635_v36 = vpop.f32.mrb[6].mxu1  ;;  %676 = vmatpush3.bf16.msra.mxu0 %v675_v31 }
 0x1cf   :  { %v409_v38 = vadd.f32 %v635_v36, %v280_v34  ;;  %v403_v39 = vpop.f32.mrb[7].mxu1  ;;  %677 = vmatprep.subr.bf16.mxu0 %v721_v7 }
 0x1d0   :  { %v678_v40 = vpack.c.bf16 %v417_v33, %v416_v35  ;;  %v404_v41 = vadd.f32 %v403_v39, %v275_v37 }
 0x1d1   :  { %v419_v42 = vmax.f32 %v409_v38, 0.0 }
 0x1d2   :  { %v418_v43 = vmax.f32 %v404_v41, 0.0  ;;  %679 = vmatpush3.bf16.msra.mxu0 %v678_v40 }
 0x1d3   :  { %680 = vmatprep.subr.bf16.mxu0 %v721_v7 }
 0x1d4   :  { %v681_v44 = vpack.c.bf16 %v419_v42, %v418_v43 }
 0x1d6   :  { %682 = vmatpush3.bf16.msra.mxu0 %v681_v44 }
 0x1d9   :  { %653 = vmatmul.mubr.msk.f32.vlgmr.msra.gmra.mrb[8].mxu0 %vm282_vm2, %v420_v45 }
 0x2ac   :  { %v496_v47 = vpop.f32.mrb[8].mxu0 }
 0x2ad   :  { %v497_v48 = vadd.f32 %v496_v47, %v425_v46  ;;  %v654_v49 = vpop.f32.mrb[9].mxu0 }
 0x2af   :  { %v501_v50 = vrot.slane %v497_v48, 1 }
 0x2b1   :  { %v503_v51 = vmax.f32 %v497_v48, %v501_v50 }
 0x2b3   :  { %v504_v52 = vsub.f32 %v497_v48, %v503_v51  ;;  %v508_v53 = vrot.slane %v503_v51, 7 }
 0x2b5   :  { %v510_v54 = vsub.f32 %v497_v48, %v508_v53  ;;  %v505_v55 = vmul.f32 1.442695, %v504_v52 }
 0x2b7   :  { %v511_v56 = vmul.f32 1.442695, %v510_v54 }
 0x2b9   :  { %690 = vpow2.f32 %v511_v56 }
 0x2ba   :  { %692 = vpow2.f32 %v505_v55 }
 0x2c3   :  { %v691_v57 = vpop.eup %690 }
 0x2c4   :  { %v514_v58 = vrot.slane %v691_v57, 1  ;;  %v693_v59 = vpop.eup %692 }
 0x2c6   :  { %v516_v60 = vadd.f32 %v693_v59, %v514_v58 }
 0x2c8   :  { %694 = vrcp.f32 %v516_v60 }
 0x2d2   :  { %v695_v61 = vpop.eup %694 }
 0x2d3   :  { %v518_v62 = vmul.f32 %v695_v61, %v516_v60 }
 0x2d5   :  { %v519_v63 = vsub.f32 2.0, %v518_v62 }
 0x2d7   :  { %v520_v0 = vmul.f32 %v695_v61, %v519_v63 }
 0x2d9   :  { %v521_v1 = vmul.f32 %v693_v59, %v520_v0  ;;  %v524_v2 = vrot.slane %v520_v0, 7 }
 0x2db   :  { %522 = vst [vmem:[#allocation2] sm:$0x1] %v521_v1  ;;  %v526_v3 = vmul.f32 %v691_v57, %v524_v2 }
 0x2dd   :  { %527 = vst [vmem:[#allocation2] sm:$0x2] %v526_v3 }
 0x2de   :  { %707 = shalt.err (!%p704_p4)
}
 0x2df   :  { %s708_s19 = scalar_lea.hbm %s906_s7, 32 }
 0x2e0   :  { %p709_p5 = scmp.ne.s32.totalorder %s906_s7, %s708_s19  ;;  %p712_p6 = scmp.lt.u32.totalorder %s708_s19, %s906_s7 }
 0x2e2   :  { %p714_p7 = pnand %p712_p6, %p709_p5 }
 0x2e4   :  { %717 = shalt.err (!%p714_p7)
}
 0x2e5   :  { %537 = dma.vmem_to_hbm [thread:$0]  %s535_s2, 32, %s906_s7, [#allocation3]  }
 0x2e6   :  { %718 = dma.done.wait [#allocation3], 32  }
 0x2e7   :  { %719 = vsyncadd [#allocation3], 4294967264 }
 0x2e8   :  { %541 = vsyncpa [#allocation3], 1 }

</bundles_post_ra>
